<compile_context>
chip_gen: v7x
topology: tpu7x:2x2x1
jax: 0.10.0
libtpu: 0.0.40
codegen_flags: <defaults>
</compile_context>

<pallas_src>
import jax
import jax.numpy as jnp
from jax.experimental import pallas as pl
from jax.experimental.pallas import tpu as pltpu


def _round_up(x, m):
    return ((x + m - 1) // m) * m


def _block_diag(w, n):
    """kron(I_n, w): block-diagonal repeat of a (fi, fo) weight -> (n*fi, n*fo)."""
    return jnp.kron(jnp.eye(n, dtype=w.dtype), w)


# ---------------- fused forward ----------------

def heterogeneous_policy_forward(params, units, transports,
                                 matmul_dtype=jnp.bfloat16,
                                 out_dtype=jnp.bfloat16,
                                 row_tile=512):
    B, NU, UI = units.shape
    Bt, NT, TI = transports.shape
    assert Bt == B

    ent_feat = params["u_w2"].shape[1]        # 32
    fc_hidden = params["f_w1"].shape[1]       # 128
    out_size = params["f_w2"].shape[1]
    assert params["f_w1"].shape[0] == (NU + NT) * ent_feat

    out_pad = _round_up(max(out_size, 128), 128)
    mmt = matmul_dtype

    # ---- batch tiling (sublane-aligned; >=2 grid steps for v7x megacore) ----
    tile_b = max(8, _round_up(min(row_tile, B), 8))
    if B > 8:
        tile_b = max(8, min(tile_b, _round_up(pl.cdiv(B, 2), 8)))
    num_tiles = pl.cdiv(B, tile_b)

    # ---- wrapper-side prep: free reshapes of data, O(weight)-sized ops ----
    units2d = units.reshape(B, NU * UI)          # no copy (trailing-dim merge)
    trans2d = transports.reshape(B, NT * TI)     # no copy

    u_w1b = _block_diag(params["u_w1"], NU).astype(mmt)     # (NU*UI, NU*64)
    u_b1t = jnp.tile(params["u_b1"], (1, NU))               # (1, NU*64)  f32
    u_w2b = _block_diag(params["u_w2"], NU).astype(mmt)     # (NU*64, NU*32)
    u_b2t = jnp.tile(params["u_b2"], (1, NU))               # (1, NU*32)  f32
    t_w1b = _block_diag(params["t_w1"], NT).astype(mmt)     # (NT*TI, NT*64)
    t_b1t = jnp.tile(params["t_b1"], (1, NT))
    t_w2b = _block_diag(params["t_w2"], NT).astype(mmt)     # (NT*64, NT*32)
    t_b2t = jnp.tile(params["t_b2"], (1, NT))

    # fc first layer, split along K over the implicit [units | transports]
    # concatenation (no lane concat / relayout needed in the kernel).
    f_w1_u = params["f_w1"][:NU * ent_feat].astype(mmt)     # (NU*32, 128)
    f_w1_t = params["f_w1"][NU * ent_feat:].astype(mmt)     # (NT*32, 128)
    f_b1 = params["f_b1"]                                   # (1, 128)    f32

    # Lane-dense final layer: pad columns to out_pad; padded logits get a
    # -1e30 bias (kept in f32) so they vanish under the max-subtracted softmax.
    f_w2p = jnp.zeros((fc_hidden, out_pad), jnp.float32).at[:, :out_size].set(
        params["f_w2"]).astype(mmt)
    f_b2p = jnp.full((1, out_pad), -1e30, jnp.float32).at[:, :out_size].set(
        params["f_b2"])

    def kernel(u_ref, t_ref,
               uw1_ref, ub1_ref, uw2_ref, ub2_ref,
               tw1_ref, tb1_ref, tw2_ref, tb2_ref,
               fw1u_ref, fw1t_ref, fb1_ref, fw2_ref, fb2_ref,
               out_ref):
        def mm(a, w_ref):
            # MXU feed in matmul_dtype (weights pre-cast), f32 accumulation.
            return jnp.dot(a, w_ref[...], preferred_element_type=jnp.float32)

        # All NU unit entities in one matmul per layer (block-diag weights).
        xu = u_ref[...].astype(mmt)                               # (tb, NU*UI)
        hu = jnp.maximum(mm(xu, uw1_ref) + ub1_ref[...], 0.0).astype(mmt)
        fu = (mm(hu, uw2_ref) + ub2_ref[...]).astype(mmt)         # (tb, NU*32)

        # All NT transport entities in one matmul per layer.
        xt = t_ref[...].astype(mmt)                               # (tb, NT*TI)
        ht = jnp.maximum(mm(xt, tw1_ref) + tb1_ref[...], 0.0).astype(mmt)
        ft = (mm(ht, tw2_ref) + tb2_ref[...]).astype(mmt)         # (tb, NT*32)

        # fc1 over the implicit concatenation: split-K sum, no relayout.
        pre = mm(fu, fw1u_ref) + mm(ft, fw1t_ref) + fb1_ref[...]
        h = jnp.maximum(pre, 0.0).astype(mmt)                     # (tb, 128)

        logits = mm(h, fw2_ref) + fb2_ref[...]                    # (tb, out_pad) f32
        mx = jnp.max(logits, axis=-1, keepdims=True)
        e = jnp.exp(logits - mx)
        s = jnp.sum(e, axis=-1, keepdims=True)
        out_ref[...] = (e * pl.reciprocal(s, approx=True)).astype(out_ref.dtype)

    def whole_spec(arr):
        # full array as one block, constant index -> fetched to VMEM once
        return pl.BlockSpec(arr.shape, lambda i: (0,) * arr.ndim)

    weight_args = (u_w1b, u_b1t, u_w2b, u_b2t,
                   t_w1b, t_b1t, t_w2b, t_b2t,
                   f_w1_u, f_w1_t, f_b1, f_w2p, f_b2p)

    out = pl.pallas_call(
        kernel,
        out_shape=jax.ShapeDtypeStruct((B, out_pad), out_dtype),
        grid=(num_tiles,),
        in_specs=[pl.BlockSpec((tile_b, NU * UI), lambda i: (i, 0)),
                  pl.BlockSpec((tile_b, NT * TI), lambda i: (i, 0))]
                 + [whole_spec(w) for w in weight_args],
        out_specs=pl.BlockSpec((tile_b, out_pad), lambda i: (i, 0)),
        compiler_params=pltpu.CompilerParams(
            dimension_semantics=("parallel",),
            vmem_limit_bytes=32 * 1024 * 1024),
    )(units2d, trans2d, *weight_args)

    # TODO(synk): fuse this small lane-slice with the downstream consumer to
    # avoid one extra HBM pass over the (already lane-dense) output.
    return out[:, :out_size]


# ---------------- parameter init (deterministic, in-script) ----------------

def _linear_params(key, fan_in, fan_out):
    kw, kb = jax.random.split(key)
    bound = 1.0 / jnp.sqrt(jnp.float32(fan_in))
    w = jax.random.uniform(kw, (fan_in, fan_out), jnp.float32, -bound, bound)
    b = jax.random.uniform(kb, (1, fan_out), jnp.float32, -bound, bound)
    return w, b


def init_params(key, unit_input_size, transport_input_size,
                num_units, num_transports, output_size):
    ks = jax.random.split(key, 6)
    p = {}
    p["u_w1"], p["u_b1"] = _linear_params(ks[0], unit_input_size, 64)
    p["u_w2"], p["u_b2"] = _linear_params(ks[1], 64, 32)
    p["t_w1"], p["t_b1"] = _linear_params(ks[2], transport_input_size, 64)
    p["t_w2"], p["t_b2"] = _linear_params(ks[3], 64, 32)
    comb = num_units * 32 + num_transports * 32
    p["f_w1"], p["f_b1"] = _linear_params(ks[4], comb, 128)
    p["f_w2"], p["f_b2"] = _linear_params(ks[5], 128, output_size)
    return p


# ---------------- pure-JAX reference (fp32) ----------------

def reference_forward(params, units, transports):
    B = units.shape[0]

    def mlp(x, w1, b1, w2, b2):
        h = jnp.maximum(x @ w1 + b1, 0.0)
        return h @ w2 + b2

    uf = mlp(units.reshape(-1, units.shape[-1]),
             params["u_w1"], params["u_b1"],
             params["u_w2"], params["u_b2"]).reshape(B, -1)
    tf = mlp(transports.reshape(-1, transports.shape[-1]),
             params["t_w1"], params["t_b1"],
             params["t_w2"], params["t_b2"]).reshape(B, -1)
    comb = jnp.concatenate([uf, tf], axis=1)
    h = jnp.maximum(comb @ params["f_w1"] + params["f_b1"], 0.0)
    logits = h @ params["f_w2"] + params["f_b2"]
    return jax.nn.softmax(logits, axis=-1)


if __name__ == "__main__":
    B = 2
    num_units, num_transports = 4, 3
    unit_input_size, transport_input_size = 8, 6
    output_size = 10

    key = jax.random.PRNGKey(0)
    k_u, k_t, k_p = jax.random.split(key, 3)

    units = jax.random.normal(k_u, (B, num_units, unit_input_size), jnp.float32)
    transports = jax.random.normal(
        k_t, (B, num_transports, transport_input_size), jnp.float32)

    params = init_params(k_p, unit_input_size, transport_input_size,
                         num_units, num_transports, output_size)

    fwd = jax.jit(heterogeneous_policy_forward)
    out = jax.block_until_ready(fwd(params, units, transports))

    out_f32 = out.astype(jnp.float32)
    assert out.shape == (B, output_size)
    assert bool(jnp.all(jnp.isfinite(out_f32)))
    # softmax rows sum to ~1 (bf16 output + approx reciprocal on the EUP)
    assert bool(jnp.allclose(jnp.sum(out_f32, axis=-1), 1.0, atol=3e-2))
    # matches the pure-JAX fp32 reference (bf16 MXU feed, fp32 accumulation)
    ref = reference_forward(params, units, transports)
    assert bool(jnp.allclose(out_f32, ref, atol=4e-2)), \
        float(jnp.max(jnp.abs(out_f32 - ref)))
    print("KERNEL_OK")
</pallas_src>

<mosaic_0001>
module attributes {stable_mosaic.version = 11 : i64} {
  func.func @kernel(%arg0: i32, %arg1: memref<8x32xf32, #tpu.memory_space<vmem>>, %arg2: memref<8x18xf32, #tpu.memory_space<vmem>>, %arg3: memref<32x256xbf16, #tpu.memory_space<vmem>>, %arg4: memref<1x256xf32, #tpu.memory_space<vmem>>, %arg5: memref<256x128xbf16, #tpu.memory_space<vmem>>, %arg6: memref<1x128xf32, #tpu.memory_space<vmem>>, %arg7: memref<18x192xbf16, #tpu.memory_space<vmem>>, %arg8: memref<1x192xf32, #tpu.memory_space<vmem>>, %arg9: memref<192x96xbf16, #tpu.memory_space<vmem>>, %arg10: memref<1x96xf32, #tpu.memory_space<vmem>>, %arg11: memref<128x128xbf16, #tpu.memory_space<vmem>>, %arg12: memref<96x128xbf16, #tpu.memory_space<vmem>>, %arg13: memref<1x128xf32, #tpu.memory_space<vmem>>, %arg14: memref<128x128xbf16, #tpu.memory_space<vmem>>, %arg15: memref<1x128xf32, #tpu.memory_space<vmem>>, %arg16: memref<8x128xbf16, #tpu.memory_space<vmem>>) attributes {dimension_semantics = [#tpu.dimension_semantics<parallel>], iteration_bounds = array<i64: 1>, scalar_prefetch = 0 : i64, scratch_operands = 0 : i64, tpu.core_type = #tpu.core_type<tc>, window_params = [{transform_indices = @transform_0, window_bounds = array<i64: 8, 32>}, {transform_indices = @transform_1, window_bounds = array<i64: 8, 18>}, {pipeline_mode = #tpu.pipeline_mode<synchronous>, transform_indices = @transform_2, window_bounds = array<i64: 32, 256>}, {pipeline_mode = #tpu.pipeline_mode<synchronous>, transform_indices = @transform_3, window_bounds = array<i64: 1, 256>}, {pipeline_mode = #tpu.pipeline_mode<synchronous>, transform_indices = @transform_4, window_bounds = array<i64: 256, 128>}, {pipeline_mode = #tpu.pipeline_mode<synchronous>, transform_indices = @transform_5, window_bounds = array<i64: 1, 128>}, {pipeline_mode = #tpu.pipeline_mode<synchronous>, transform_indices = @transform_6, window_bounds = array<i64: 18, 192>}, {pipeline_mode = #tpu.pipeline_mode<synchronous>, transform_indices = @transform_7, window_bounds = array<i64: 1, 192>}, {pipeline_mode = #tpu.pipeline_mode<synchronous>, transform_indices = @transform_8, window_bounds = array<i64: 192, 96>}, {pipeline_mode = #tpu.pipeline_mode<synchronous>, transform_indices = @transform_9, window_bounds = array<i64: 1, 96>}, {pipeline_mode = #tpu.pipeline_mode<synchronous>, transform_indices = @transform_10, window_bounds = array<i64: 128, 128>}, {pipeline_mode = #tpu.pipeline_mode<synchronous>, transform_indices = @transform_11, window_bounds = array<i64: 96, 128>}, {pipeline_mode = #tpu.pipeline_mode<synchronous>, transform_indices = @transform_12, window_bounds = array<i64: 1, 128>}, {pipeline_mode = #tpu.pipeline_mode<synchronous>, transform_indices = @transform_13, window_bounds = array<i64: 128, 128>}, {pipeline_mode = #tpu.pipeline_mode<synchronous>, transform_indices = @transform_14, window_bounds = array<i64: 1, 128>}, {transform_indices = @transform_15, window_bounds = array<i64: 8, 128>}]} {
    %c0 = arith.constant 0 : index
    %c0_0 = arith.constant 0 : index
    %0 = vector.load %arg1[%c0, %c0_0] : memref<8x32xf32, #tpu.memory_space<vmem>>, vector<8x32xf32>
    %1 = arith.truncf %0 : vector<8x32xf32> to vector<8x32xbf16>
    %c0_1 = arith.constant 0 : index
    %c0_2 = arith.constant 0 : index
    %2 = vector.load %arg3[%c0_1, %c0_2] : memref<32x256xbf16, #tpu.memory_space<vmem>>, vector<32x256xbf16>
    %cst = arith.constant dense<0.000000e+00> : vector<8x256xf32>
    %3 = tpu.matmul %1, %2, %cst {dimension_numbers = #tpu.dot_dimension_numbers<[1], [0], [0], [1], [0, 0, 1, 1], [], []>} : vector<8x32xbf16>, vector<32x256xbf16>, vector<8x256xf32> -> vector<8x256xf32>
    %c0_3 = arith.constant 0 : index
    %c0_4 = arith.constant 0 : index
    %4 = vector.load %arg4[%c0_3, %c0_4] : memref<1x256xf32, #tpu.memory_space<vmem>>, vector<1x256xf32>
    %5 = vector.broadcast %4 : vector<1x256xf32> to vector<8x256xf32>
    %6 = arith.addf %3, %5 : vector<8x256xf32>
    %cst_5 = arith.constant 0.000000e+00 : f32
    %7 = vector.broadcast %cst_5 : f32 to vector<8x256xf32>
    %8 = arith.maximumf %6, %7 : vector<8x256xf32>
    %9 = arith.truncf %8 : vector<8x256xf32> to vector<8x256xbf16>
    %c0_6 = arith.constant 0 : index
    %c0_7 = arith.constant 0 : index
    %10 = vector.load %arg5[%c0_6, %c0_7] : memref<256x128xbf16, #tpu.memory_space<vmem>>, vector<256x128xbf16>
    %cst_8 = arith.constant dense<0.000000e+00> : vector<8x128xf32>
    %11 = tpu.matmul %9, %10, %cst_8 {dimension_numbers = #tpu.dot_dimension_numbers<[1], [0], [0], [1], [0, 0, 1, 1], [], []>} : vector<8x256xbf16>, vector<256x128xbf16>, vector<8x128xf32> -> vector<8x128xf32>
    %c0_9 = arith.constant 0 : index
    %c0_10 = arith.constant 0 : index
    %12 = vector.load %arg6[%c0_9, %c0_10] : memref<1x128xf32, #tpu.memory_space<vmem>>, vector<1x128xf32>
    %13 = vector.broadcast %12 : vector<1x128xf32> to vector<8x128xf32>
    %14 = arith.addf %11, %13 : vector<8x128xf32>
    %15 = arith.truncf %14 : vector<8x128xf32> to vector<8x128xbf16>
    %c0_11 = arith.constant 0 : index
    %c0_12 = arith.constant 0 : index
    %16 = vector.load %arg2[%c0_11, %c0_12] : memref<8x18xf32, #tpu.memory_space<vmem>>, vector<8x18xf32>
    %17 = arith.truncf %16 : vector<8x18xf32> to vector<8x18xbf16>
    %c0_13 = arith.constant 0 : index
    %c0_14 = arith.constant 0 : index
    %18 = vector.load %arg7[%c0_13, %c0_14] : memref<18x192xbf16, #tpu.memory_space<vmem>>, vector<18x192xbf16>
    %cst_15 = arith.constant dense<0.000000e+00> : vector<8x192xf32>
    %19 = tpu.matmul %17, %18, %cst_15 {dimension_numbers = #tpu.dot_dimension_numbers<[1], [0], [0], [1], [0, 0, 1, 1], [], []>} : vector<8x18xbf16>, vector<18x192xbf16>, vector<8x192xf32> -> vector<8x192xf32>
    %c0_16 = arith.constant 0 : index
    %c0_17 = arith.constant 0 : index
    %20 = vector.load %arg8[%c0_16, %c0_17] : memref<1x192xf32, #tpu.memory_space<vmem>>, vector<1x192xf32>
    %21 = vector.broadcast %20 : vector<1x192xf32> to vector<8x192xf32>
    %22 = arith.addf %19, %21 : vector<8x192xf32>
    %cst_18 = arith.constant 0.000000e+00 : f32
    %23 = vector.broadcast %cst_18 : f32 to vector<8x192xf32>
    %24 = arith.maximumf %22, %23 : vector<8x192xf32>
    %25 = arith.truncf %24 : vector<8x192xf32> to vector<8x192xbf16>
    %c0_19 = arith.constant 0 : index
    %c0_20 = arith.constant 0 : index
    %26 = vector.load %arg9[%c0_19, %c0_20] : memref<192x96xbf16, #tpu.memory_space<vmem>>, vector<192x96xbf16>
    %cst_21 = arith.constant dense<0.000000e+00> : vector<8x96xf32>
    %27 = tpu.matmul %25, %26, %cst_21 {dimension_numbers = #tpu.dot_dimension_numbers<[1], [0], [0], [1], [0, 0, 1, 1], [], []>} : vector<8x192xbf16>, vector<192x96xbf16>, vector<8x96xf32> -> vector<8x96xf32>
    %c0_22 = arith.constant 0 : index
    %c0_23 = arith.constant 0 : index
    %28 = vector.load %arg10[%c0_22, %c0_23] : memref<1x96xf32, #tpu.memory_space<vmem>>, vector<1x96xf32>
    %29 = vector.broadcast %28 : vector<1x96xf32> to vector<8x96xf32>
    %30 = arith.addf %27, %29 : vector<8x96xf32>
    %31 = arith.truncf %30 : vector<8x96xf32> to vector<8x96xbf16>
    %c0_24 = arith.constant 0 : index
    %c0_25 = arith.constant 0 : index
    %32 = vector.load %arg11[%c0_24, %c0_25] : memref<128x128xbf16, #tpu.memory_space<vmem>>, vector<128x128xbf16>
    %cst_26 = arith.constant dense<0.000000e+00> : vector<8x128xf32>
    %33 = tpu.matmul %15, %32, %cst_26 {dimension_numbers = #tpu.dot_dimension_numbers<[1], [0], [0], [1], [0, 0, 1, 1], [], []>} : vector<8x128xbf16>, vector<128x128xbf16>, vector<8x128xf32> -> vector<8x128xf32>
    %c0_27 = arith.constant 0 : index
    %c0_28 = arith.constant 0 : index
    %34 = vector.load %arg12[%c0_27, %c0_28] : memref<96x128xbf16, #tpu.memory_space<vmem>>, vector<96x128xbf16>
    %cst_29 = arith.constant dense<0.000000e+00> : vector<8x128xf32>
    %35 = tpu.matmul %31, %34, %cst_29 {dimension_numbers = #tpu.dot_dimension_numbers<[1], [0], [0], [1], [0, 0, 1, 1], [], []>} : vector<8x96xbf16>, vector<96x128xbf16>, vector<8x128xf32> -> vector<8x128xf32>
    %36 = arith.addf %33, %35 : vector<8x128xf32>
    %c0_30 = arith.constant 0 : index
    %c0_31 = arith.constant 0 : index
    %37 = vector.load %arg13[%c0_30, %c0_31] : memref<1x128xf32, #tpu.memory_space<vmem>>, vector<1x128xf32>
    %38 = vector.broadcast %37 : vector<1x128xf32> to vector<8x128xf32>
    %39 = arith.addf %36, %38 : vector<8x128xf32>
    %cst_32 = arith.constant 0.000000e+00 : f32
    %40 = vector.broadcast %cst_32 : f32 to vector<8x128xf32>
    %41 = arith.maximumf %39, %40 : vector<8x128xf32>
    %42 = arith.truncf %41 : vector<8x128xf32> to vector<8x128xbf16>
    %c0_33 = arith.constant 0 : index
    %c0_34 = arith.constant 0 : index
    %43 = vector.load %arg14[%c0_33, %c0_34] : memref<128x128xbf16, #tpu.memory_space<vmem>>, vector<128x128xbf16>
    %cst_35 = arith.constant dense<0.000000e+00> : vector<8x128xf32>
    %44 = tpu.matmul %42, %43, %cst_35 {dimension_numbers = #tpu.dot_dimension_numbers<[1], [0], [0], [1], [0, 0, 1, 1], [], []>} : vector<8x128xbf16>, vector<128x128xbf16>, vector<8x128xf32> -> vector<8x128xf32>
    %c0_36 = arith.constant 0 : index
    %c0_37 = arith.constant 0 : index
    %45 = vector.load %arg15[%c0_36, %c0_37] : memref<1x128xf32, #tpu.memory_space<vmem>>, vector<1x128xf32>
    %46 = vector.broadcast %45 : vector<1x128xf32> to vector<8x128xf32>
    %47 = arith.addf %44, %46 : vector<8x128xf32>
    %cst_38 = arith.constant dense<0xFF800000> : vector<8xf32>
    %48 = vector.multi_reduction <maximumf>, %47, %cst_38 [1] : vector<8x128xf32> to vector<8xf32>
    %49 = vector.shape_cast %48 : vector<8xf32> to vector<8x1xf32>
    %50 = vector.broadcast %49 : vector<8x1xf32> to vector<8x128xf32>
    %51 = arith.subf %47, %50 : vector<8x128xf32>
    %52 = math.exp %51 : vector<8x128xf32>
    %cst_39 = arith.constant dense<0.000000e+00> : vector<8xf32>
    %53 = vector.multi_reduction <add>, %52, %cst_39 [1] : vector<8x128xf32> to vector<8xf32>
    %54 = vector.shape_cast %53 : vector<8xf32> to vector<8x1xf32>
    %55 = tpu.reciprocal %54 {approx = true} : vector<8x1xf32> -> vector<8x1xf32>
    %56 = vector.broadcast %55 : vector<8x1xf32> to vector<8x128xf32>
    %57 = arith.mulf %52, %56 : vector<8x128xf32>
    %58 = arith.truncf %57 : vector<8x128xf32> to vector<8x128xbf16>
    %c0_40 = arith.constant 0 : index
    %c0_41 = arith.constant 0 : index
    %59 = vector.load %arg16[%c0_40, %c0_41] : memref<8x128xbf16, #tpu.memory_space<vmem>>, vector<8x128xbf16>
    tpu.vector_store %arg16[%c0_40, %c0_41], %58 {strides = array<i32>} : memref<8x128xbf16, #tpu.memory_space<vmem>>, vector<8x128xbf16>,
    return
  }
  func.func @transform_0(%arg0: i32) -> (i32, i32) {
    %c0_i32 = arith.constant 0 : i32
    %c0_i32_0 = arith.constant 0 : i32
    return %arg0, %c0_i32 : i32, i32
  }
  func.func @transform_1(%arg0: i32) -> (i32, i32) {
    %c0_i32 = arith.constant 0 : i32
    %c0_i32_0 = arith.constant 0 : i32
    return %arg0, %c0_i32 : i32, i32
  }
  func.func @transform_2(%arg0: i32) -> (i32, i32) {
    %c0_i32 = arith.constant 0 : i32
    %c0_i32_0 = arith.constant 0 : i32
    %c0_i32_1 = arith.constant 0 : i32
    return %c0_i32, %c0_i32_0 : i32, i32
  }
  func.func @transform_3(%arg0: i32) -> (i32, i32) {
    %c0_i32 = arith.constant 0 : i32
    %c0_i32_0 = arith.constant 0 : i32
    %c0_i32_1 = arith.constant 0 : i32
    return %c0_i32, %c0_i32_0 : i32, i32
  }
  func.func @transform_4(%arg0: i32) -> (i32, i32) {
    %c0_i32 = arith.constant 0 : i32
    %c0_i32_0 = arith.constant 0 : i32
    %c0_i32_1 = arith.constant 0 : i32
    return %c0_i32, %c0_i32_0 : i32, i32
  }
  func.func @transform_5(%arg0: i32) -> (i32, i32) {
    %c0_i32 = arith.constant 0 : i32
    %c0_i32_0 = arith.constant 0 : i32
    %c0_i32_1 = arith.constant 0 : i32
    return %c0_i32, %c0_i32_0 : i32, i32
  }
  func.func @transform_6(%arg0: i32) -> (i32, i32) {
    %c0_i32 = arith.constant 0 : i32
    %c0_i32_0 = arith.constant 0 : i32
    %c0_i32_1 = arith.constant 0 : i32
    return %c0_i32, %c0_i32_0 : i32, i32
  }
  func.func @transform_7(%arg0: i32) -> (i32, i32) {
    %c0_i32 = arith.constant 0 : i32
    %c0_i32_0 = arith.constant 0 : i32
    %c0_i32_1 = arith.constant 0 : i32
    return %c0_i32, %c0_i32_0 : i32, i32
  }
  func.func @transform_8(%arg0: i32) -> (i32, i32) {
    %c0_i32 = arith.constant 0 : i32
    %c0_i32_0 = arith.constant 0 : i32
    %c0_i32_1 = arith.constant 0 : i32
    return %c0_i32, %c0_i32_0 : i32, i32
  }
  func.func @transform_9(%arg0: i32) -> (i32, i32) {
    %c0_i32 = arith.constant 0 : i32
    %c0_i32_0 = arith.constant 0 : i32
    %c0_i32_1 = arith.constant 0 : i32
    return %c0_i32, %c0_i32_0 : i32, i32
  }
  func.func @transform_10(%arg0: i32) -> (i32, i32) {
    %c0_i32 = arith.constant 0 : i32
    %c0_i32_0 = arith.constant 0 : i32
    %c0_i32_1 = arith.constant 0 : i32
    return %c0_i32, %c0_i32_0 : i32, i32
  }
  func.func @transform_11(%arg0: i32) -> (i32, i32) {
    %c0_i32 = arith.constant 0 : i32
    %c0_i32_0 = arith.constant 0 : i32
    %c0_i32_1 = arith.constant 0 : i32
    return %c0_i32, %c0_i32_0 : i32, i32
  }
  func.func @transform_12(%arg0: i32) -> (i32, i32) {
    %c0_i32 = arith.constant 0 : i32
    %c0_i32_0 = arith.constant 0 : i32
    %c0_i32_1 = arith.constant 0 : i32
    return %c0_i32, %c0_i32_0 : i32, i32
  }
  func.func @transform_13(%arg0: i32) -> (i32, i32) {
    %c0_i32 = arith.constant 0 : i32
    %c0_i32_0 = arith.constant 0 : i32
    %c0_i32_1 = arith.constant 0 : i32
    return %c0_i32, %c0_i32_0 : i32, i32
  }
  func.func @transform_14(%arg0: i32) -> (i32, i32) {
    %c0_i32 = arith.constant 0 : i32
    %c0_i32_0 = arith.constant 0 : i32
    %c0_i32_1 = arith.constant 0 : i32
    return %c0_i32, %c0_i32_0 : i32, i32
  }
  func.func @transform_15(%arg0: i32) -> (i32, i32) {
    %c0_i32 = arith.constant 0 : i32
    %c0_i32_0 = arith.constant 0 : i32
    return %arg0, %c0_i32 : i32, i32
  }
}

</mosaic_0001>

<bundles_post_ra>
// kernel: heterogeneous_policy_forward.1
= control target key start
LH: loop header
LB: loop body
LE: loop exit
PB: predicated region body
PF: predicated region fallthrough
CT: control target
= control target key end

     0   :  { %20 = vsyncpa [#allocation3], 0  ;;  %v1195_v2 = vmov 0   ;;  %vm90_vm0 = vcmask 261120   ;;  %vm351_vm1 = vcmask 1040384   ;;  %vm347_vm2 = vcmask 146432   ;;  %s1536_s0 = inlined_call_operand.vmem [shape: f32[2,32], index: 0, kind: input, shape index: {}]   ;;  %s1537_s1 = inlined_call_operand.vmem [shape: f32[2,18], index: 1, kind: input, shape index: {}]   ;;  %s1538_s2 = inlined_call_operand.vmem [shape: bf16[32,256], index: 2, kind: input, shape index: {}]   ;;  %s1539_s3 = inlined_call_operand.vmem [shape: f32[1,256], index: 3, kind: input, shape index: {}]   ;;  %s1540_s4 = inlined_call_operand.vmem [shape: bf16[256,128], index: 4, kind: input, shape index: {}]   ;;  %s1541_s5 = inlined_call_operand.vmem [shape: f32[1,128], index: 5, kind: input, shape index: {}]   ;;  %s1542_s6 = inlined_call_operand.vmem [shape: bf16[18,192], index: 6, kind: input, shape index: {}]   ;;  %s1543_s7 = inlined_call_operand.vmem [shape: f32[1,192], index: 7, kind: input, shape index: {}]   ;;  %s1544_s8 = inlined_call_operand.vmem [shape: bf16[192,96], index: 8, kind: input, shape index: {}]   ;;  %s1545_s9 = inlined_call_operand.vmem [shape: f32[1,96], index: 9, kind: input, shape index: {}]   ;;  %s1546_s10 = inlined_call_operand.vmem [shape: bf16[128,128], index: 10, kind: input, shape index: {}]   ;;  %s1547_s11 = inlined_call_operand.vmem [shape: bf16[96,128], index: 11, kind: input, shape index: {}]   ;;  %s1548_s12 = inlined_call_operand.vmem [shape: f32[1,128], index: 12, kind: input, shape index: {}]   ;;  %s1549_s13 = inlined_call_operand.vmem [shape: bf16[128,128], index: 13, kind: input, shape index: {}]   ;;  %s1550_s14 = inlined_call_operand.vmem [shape: f32[1,128], index: 14, kind: input, shape index: {}]   ;;  %s1551_s15 = inlined_call_operand.hbm [shape: bf16[2,128], index: 15, kind: output, shape index: {}]  }
   0x1   :  { %v1106_v0 = vld [vmem:[%s1538_s2 + $0x4] ss:$8 sps:$4 sm:$0xff]   ;;  %v1108_v1 = vld [vmem:[%s1538_s2] ss:$8 sps:$4 sm:$0xff]   ;;  %126 = vmatprep.mubr.bf16.mxu0 %v1195_v2  ;;  %v1109_v3 = vld [vmem:[%s1538_s2 + $0x14] ss:$8 sps:$4 sm:$0xff]   ;;  %v60_v44 = vlaneseq }
   0x2   :  { %94 = vmatprep.subr.bf16.mxu0 %v1106_v0  ;;  %v1111_v4 = vld [vmem:[%s1538_s2 + $0x10] ss:$8 sps:$4 sm:$0xff]   ;;  %v52_v5 = vld [vmem:[%s1536_s0] sm:$0xff]  ;;  %v1122_v15 = vld [vmem:[%s1540_s4 + $0x48] sm:$0xff]   ;;  %v1196_v43 = vmov 0.0   ;;  %vm506_vm3 = vcmask 523264  }
   0x3   :  { %95 = vmatpush1.bf16.msra.mxu0 %v1108_v1  ;;  %v1114_v6 = vld [vmem:[%s1542_s6 + $0x4] ss:$8 sps:$4 sm:$0xff]   ;;  %v319_v7 = vld [vmem:[%s1542_s6 + $0x10] sm:$0x11]  ;;  %v53_v8 = vpack.c.bf16 %v52_v5, %v52_v5  ;;  %v1112_v9 = vld [vmem:[%s1542_s6] ss:$8 sps:$4 sm:$0xff]  }
   0x4   :  { %96 = vmatprep.subr.bf16.mxu0 %v1109_v3  ;;  %v1119_v10 = vld [vmem:[%s1540_s4 + $0x40] sm:$0xff]   ;;  %v952_v11 = vcombine.high %v319_v7, %v319_v7  ;;  %v951_v12 = vcombine.low %v319_v7, %v319_v7  ;;  %v1123_v16 = vld [vmem:[%s1540_s4 + $0x8] sm:$0xff]   ;;  %v1125_v18 = vld [vmem:[%s1540_s4 + $0x50] sm:$0xff]   ;;  %v1409_v45 = vshrl.u32 %v60_v44, 7  ;;  %vm1197_vm4 = vmmov 0  }
   0x5   :  { %v1120_v13 = vld [vmem:[%s1540_s4] sm:$0xff]   ;;  %996 = vmatprep.subr.bf16.mxu1 %v1119_v10  ;;  %v1126_v20 = vld [vmem:[%s1540_s4 + $0x10] sm:$0xff]   ;;  %v1128_v22 = vld [vmem:[%s1540_s4 + $0x58] sm:$0xff]   ;;  %vm615_vm5 = vcmask 785408  }
   0x6   :  { %v315_v14 = vld [vmem:[%s1537_s1] sm:$0xff]  ;;  %997 = vmatpush3.bf16.msra.mxu1 %v1120_v13  ;;  %v353_v17 = vsel %vm351_vm1, %v951_v12, 0  ;;  %v1118_v23 = vld [vmem:[%s1544_s8 + $0x8] sm:$0xff]   ;;  %v1129_v24 = vld [vmem:[%s1540_s4 + $0x18] sm:$0xff]   ;;  %v62_v46 = vsub.s32 0, %v1409_v45  ;;  %v66_v48 = vsub.s32 1, %v1409_v45 }
   0x7   :  { %97 = vmatpush1.bf16.msra.mxu0 %v1111_v4  ;;  %998 = vmatprep.subr.bf16.mxu1 %v1122_v15  ;;  %v316_v19 = vpack.c.bf16 %v315_v14, %v315_v14  ;;  %v1117_v21 = vld [vmem:[%s1544_s8] sm:$0xff]   ;;  %v1121_v26 = vld [vmem:[%s1544_s8 + $0x10] sm:$0xff]   ;;  %v1134_v28 = vld [vmem:[%s1540_s4 + $0x68] sm:$0xff]  }
   0x8   :  { %358 = vmatprep.subr.bf16.mxu0 %v1114_v6  ;;  %v1131_v25 = vld [vmem:[%s1540_s4 + $0x60] sm:$0xff]   ;;  %v1135_v29 = vld [vmem:[%s1540_s4 + $0x28] sm:$0xff]   ;;  %v1124_v30 = vld [vmem:[%s1544_s8 + $0x18] sm:$0xff]  }
   0x9   :  { %v1132_v27 = vld [vmem:[%s1540_s4 + $0x20] sm:$0xff]   ;;  %v1130_v32 = vld [vmem:[%s1544_s8 + $0x28] sm:$0xff]   ;;  %v1133_v33 = vld [vmem:[%s1544_s8 + $0x30] sm:$0xff]  }
   0xa   :  { %931 = vmatmul.mubr.msk.bf16.vlgmr.msra.gmra.mrb[0].mxu0 %vm90_vm0, %v53_v8  ;;  %999 = vmatpush3.bf16.msra.mxu1 %v1123_v16  ;;  %v1127_v31 = vld [vmem:[%s1544_s8 + $0x20] sm:$0xff]   ;;  %v1136_v34 = vld [vmem:[%s1544_s8 + $0x38] sm:$0xff]   ;;  %v1137_v35 = vld [vmem:[%s1540_s4 + $0x70] sm:$0xff]  }
   0xb   :  { %359 = vmatpush1.bf16.msra.mxu0 %v1112_v9  ;;  %390 = vmatprep.mubr.bf16.mxu0 %v1195_v2  ;;  %v1138_v36 = vld [vmem:[%s1540_s4 + $0x30] sm:$0xff]   ;;  %v1139_v37 = vld [vmem:[%s1544_s8 + $0x40] sm:$0xff]   ;;  %v1140_v38 = vld [vmem:[%s1540_s4 + $0x78] sm:$0xff]  }
   0xc   :  { %953 = vmatprep.subr.msk.bf16.mxu0 %vm351_vm1, %v952_v11  ;;  %1000 = vmatprep.subr.bf16.mxu1 %v1125_v18  ;;  %v1141_v39 = vld [vmem:[%s1540_s4 + $0x38] sm:$0xff]   ;;  %v1142_v40 = vld [vmem:[%s1544_s8 + $0x48] sm:$0xff]   ;;  %v1143_v41 = vld [vmem:[%s1544_s8 + $0x50] sm:$0xff]  }
   0xd   :  { %v1144_v42 = vld [vmem:[%s1544_s8 + $0x58] sm:$0xff]   ;;  %v58_v47 = vld [vmem:[%s1539_s3] sm:$0x3]  ;;  %v1146_v6 = vld [vmem:[%s1547_s11 + $0x8] sm:$0xff]  }
   0xe   :  { %1001 = vmatpush3.bf16.msra.mxu1 %v1126_v20  ;;  %v63_v49 = vrot.slane %v58_v47, %v62_v46  ;;  %v67_v50 = vrot.slane %v58_v47, %v66_v48  ;;  %v320_v56 = vld [vmem:[%s1543_s7] sm:$0x3]  ;;  %v1147_v11 = vld [vmem:[%s1547_s11 + $0x10] sm:$0xff]   ;;  %v1148_v13 = vld [vmem:[%s1547_s11 + $0x18] sm:$0xff]  }
   0xf   :  { %361 = vmatpush1.bf16.msra.mxu0 %v353_v17  ;;  %1002 = vmatprep.subr.bf16.mxu1 %v1128_v22  ;;  %v325_v60 = vrot.slane %v320_v56, %v62_v46  ;;  %v329_v62 = vrot.slane %v320_v56, %v66_v48  ;;  %v1145_v63 = vld [vmem:[%s1547_s11] sm:$0xff]   ;;  %v1150_v15 = vld [vmem:[%s1547_s11 + $0x28] sm:$0xff]   ;;  %v1165_v47 = vld [vmem:[%s1549_s13 + $0x30] sm:$0xff]  }
  0x10   :  { %510 = vmatprep.subr.bf16.mxu0 %v1195_v2  ;;  %v1149_v14 = vld [vmem:[%s1547_s11 + $0x20] sm:$0xff]   ;;  %v1164_v46 = vld [vmem:[%s1549_s13 + $0x28] sm:$0xff]   ;;  %v1166_v48 = vld [vmem:[%s1549_s13 + $0x38] sm:$0xff]  }
  0x11   :  { %v1163_v44 = vld [vmem:[%s1549_s13 + $0x20] sm:$0xff]  }
  0x12   :  { %954 = vmatmul.mubr.msk.bf16.vlgmr.msra.gmra.mrb[4].mxu0 %vm347_vm2, %v316_v19  ;;  %1003 = vmatpush3.bf16.msra.mxu1 %v1129_v24 }
  0x13   :  { %511 = vmatpush1.bf16.msra.mxu0 %v1117_v21  ;;  %1004 = vmatprep.subr.bf16.mxu1 %v1131_v25  ;;  %v955_v21 = vld [vmem:[%s1545_s9] ss:$0 sm:$0xff] }
  0x14   :  { %512 = vmatprep.subr.bf16.mxu0 %v1195_v2 }
  0x16   :  { %1005 = vmatpush3.bf16.msra.mxu1 %v1132_v27 }
  0x17   :  { %513 = vmatpush1.bf16.msra.mxu0 %v1118_v23  ;;  %1006 = vmatprep.subr.bf16.mxu1 %v1134_v28 }
  0x18   :  { %514 = vmatprep.subr.bf16.mxu0 %v1195_v2 }
  0x1a   :  { %1007 = vmatpush3.bf16.msra.mxu1 %v1135_v29  ;;  %v1152_v29 = vld [vmem:[%s1546_s10 + $0x8] sm:$0xff]  }
  0x1b   :  { %515 = vmatpush1.bf16.msra.mxu0 %v1121_v26  ;;  %1008 = vmatprep.subr.bf16.mxu1 %v1137_v35  ;;  %v1151_v26 = vld [vmem:[%s1546_s10] sm:$0xff]  }
  0x1c   :  { %516 = vmatprep.subr.bf16.mxu0 %v1195_v2  ;;  %v932_v35 = vld [vmem:[%s1541_s5] ss:$0 sm:$0xff] }
  0x1e   :  { %1009 = vmatpush3.bf16.msra.mxu1 %v1138_v36  ;;  %v1158_v36 = vld [vmem:[%s1546_s10 + $0x38] sm:$0xff]  }
  0x1f   :  { %517 = vmatpush1.bf16.msra.mxu0 %v1124_v30  ;;  %1010 = vmatprep.subr.bf16.mxu1 %v1140_v38  ;;  %v1153_v30 = vld [vmem:[%s1546_s10 + $0x10] sm:$0xff]  }
  0x20   :  { %518 = vmatprep.subr.bf16.mxu0 %v1195_v2 }
  0x22   :  { %1011 = vmatpush3.bf16.msra.mxu1 %v1141_v39  ;;  %v1159_v39 = vld [vmem:[%s1549_s13] sm:$0xff]  }
  0x23   :  { %519 = vmatpush1.bf16.msra.mxu0 %v1127_v31  ;;  %1043 = vmatprep.subr.bf16.mxu1 %v1196_v43  ;;  %v1154_v31 = vld [vmem:[%s1546_s10 + $0x18] sm:$0xff]  }
  0x24   :  { %520 = vmatprep.subr.bf16.mxu0 %v1195_v2 }
  0x27   :  { %521 = vmatpush1.bf16.msra.mxu0 %v1130_v32  ;;  %v1155_v32 = vld [vmem:[%s1546_s10 + $0x20] sm:$0xff]  }
  0x28   :  { %522 = vmatprep.subr.bf16.mxu0 %v1195_v2 }
  0x2b   :  { %523 = vmatpush1.bf16.msra.mxu0 %v1133_v33  ;;  %v1156_v33 = vld [vmem:[%s1546_s10 + $0x28] sm:$0xff]  }
  0x2c   :  { %524 = vmatprep.subr.bf16.mxu0 %v1195_v2 }
  0x2f   :  { %525 = vmatpush1.bf16.msra.mxu0 %v1136_v34  ;;  %v1157_v34 = vld [vmem:[%s1546_s10 + $0x30] sm:$0xff]  }
  0x30   :  { %526 = vmatprep.subr.bf16.mxu0 %v1195_v2 }
  0x33   :  { %527 = vmatpush1.bf16.msra.mxu0 %v1139_v37 }
  0x34   :  { %528 = vmatprep.subr.bf16.mxu0 %v1195_v2 }
  0x37   :  { %529 = vmatpush1.bf16.msra.mxu0 %v1142_v40  ;;  %v1160_v40 = vld [vmem:[%s1549_s13 + $0x8] sm:$0xff]  }
  0x38   :  { %530 = vmatprep.subr.bf16.mxu0 %v1195_v2 }
  0x3b   :  { %531 = vmatpush1.bf16.msra.mxu0 %v1143_v41  ;;  %v1161_v41 = vld [vmem:[%s1549_s13 + $0x10] sm:$0xff]  }
  0x3c   :  { %532 = vmatprep.subr.bf16.mxu0 %v1195_v2 }
  0x3f   :  { %533 = vmatpush1.bf16.msra.mxu0 %v1144_v42  ;;  %v1162_v42 = vld [vmem:[%s1549_s13 + $0x18] sm:$0xff]  }
  0x40   :  { %1079 = vmatprep.subr.bf16.mxu0 %v1196_v43 }
  0xdd   :  { %v128_v51 = vpop.f32.mrb[0].mxu0 }
  0xde   :  { %v129_v52 = vadd.f32 %v128_v51, %v63_v49  ;;  %v130_v53 = vpop.f32.mrb[1].mxu0 }
  0xdf   :  { %v131_v54 = vadd.f32 %v130_v53, %v67_v50  ;;  %v132_v55 = vpop.f32.mrb[2].mxu0 }
  0xe0   :  { %v135_v57 = vmax.f32 %v129_v52, 0.0  ;;  %v133_v58 = vpop.f32.mrb[3].mxu0 }
  0xe1   :  { %v136_v59 = vmax.f32 %v131_v54, 0.0  ;;  %v984_v54 = vld [vmem:[%s1548_s12] ss:$0 sm:$0xff] }
  0xe2   :  { %v137_v0 = vpack.c.bf16 %v135_v57, %v135_v57 }
  0xe3   :  { %v138_v61 = vpack.c.bf16 %v136_v59, %v136_v59 }
  0xe5   :  { %306 = vmatprep.mubr.bf16.mxu1 %v138_v61  ;;  %v392_v1 = vpop.f32.mrb[4].mxu0  ;;  %v985_v61 = vld [vmem:[%s1550_s14] ss:$0 sm:$0xff] }
  0xe6   :  { %v393_v2 = vadd.f32 %v392_v1, %v325_v60  ;;  %307 = vmatmul.mubr.bf16.vlgmr.msra.gmra.mrb[0].mxu1 %v137_v0  ;;  %v394_v3 = vpop.f32.mrb[5].mxu0 }
  0xe7   :  { %v395_v4 = vadd.f32 %v394_v3, %v329_v62  ;;  %v396_v5 = vpop.f32.mrb[6].mxu0  ;;  %1044 = vmatpush3.bf16.msra.mxu1 %v1145_v63  ;;  %1055 = vmatprep.mubr.msk.bf16.mxu1 %vm1197_vm4, %v1196_v43 }
  0xe8   :  { %v399_v7 = vmax.f32 %v393_v2, 0.0  ;;  %v397_v8 = vpop.f32.mrb[7].mxu0  ;;  %1045 = vmatprep.subr.bf16.mxu1 %v1196_v43 }
  0xe9   :  { %v400_v9 = vmax.f32 %v395_v4, 0.0  ;;  %v1198_v8 = vmov 1966171168  }
  0xea   :  { %v401_v12 = vpack.c.bf16 %v399_v7, %v399_v7 }
  0xeb   :  { %v402_v10 = vpack.c.bf16 %v400_v9, %v400_v9  ;;  %1046 = vmatpush3.bf16.msra.mxu1 %v1146_v6  ;;  %v880_v9 = vunpack.c.l.s4 %v1198_v8 }
  0xec   :  { %1047 = vmatprep.subr.bf16.mxu1 %v1196_v43 }
  0xed   :  { %968 = vmatprep.mubr.msk.bf16.mxu0 %vm506_vm3, %v402_v10  ;;  %v881_v10 = vunpack.c.0.s8 %v880_v9 }
  0xee   :  { %543 = vmatmul.mubr.bf16.vlgmr.msra.gmra.mrb[8].mxu0 %v401_v12 }
  0xef   :  { %1048 = vmatpush3.bf16.msra.mxu1 %v1147_v11  ;;  %1095 = vmatprep.mubr.msk.bf16.mxu0 %vm1197_vm4, %v1196_v43  ;;  %v884_v12 = vsub.s32 %v881_v10, %v1409_v45 }
  0xf0   :  { %1049 = vmatprep.subr.bf16.mxu1 %v1196_v43  ;;  %1080 = vmatpush3.bf16.msra.mxu0 %v1159_v39 }
  0xf1   :  { %1081 = vmatprep.subr.bf16.mxu0 %v1196_v43 }
  0xf3   :  { %1050 = vmatpush3.bf16.msra.mxu1 %v1148_v13 }
  0xf4   :  { %1051 = vmatprep.subr.bf16.mxu1 %v1196_v43  ;;  %1082 = vmatpush3.bf16.msra.mxu0 %v1160_v40 }
  0xf5   :  { %1083 = vmatprep.subr.bf16.mxu0 %v1196_v43 }
  0xf7   :  { %1052 = vmatpush3.bf16.msra.mxu1 %v1149_v14 }
  0xf8   :  { %1053 = vmatprep.subr.bf16.mxu1 %v1196_v43  ;;  %1084 = vmatpush3.bf16.msra.mxu0 %v1161_v41 }
  0xf9   :  { %1085 = vmatprep.subr.bf16.mxu0 %v1196_v43 }
  0xfb   :  { %1054 = vmatpush3.bf16.msra.mxu1 %v1150_v15 }
  0xfc   :  { %1059 = vmatprep.subr.bf16.mxu1 %v1196_v43  ;;  %1086 = vmatpush3.bf16.msra.mxu0 %v1162_v42 }
  0xfd   :  { %1087 = vmatprep.subr.bf16.mxu0 %v1196_v43 }
 0x100   :  { %1088 = vmatpush3.bf16.msra.mxu0 %v1163_v44 }
 0x101   :  { %1089 = vmatprep.subr.bf16.mxu0 %v1196_v43 }
 0x104   :  { %1090 = vmatpush3.bf16.msra.mxu0 %v1164_v46 }
 0x105   :  { %1091 = vmatprep.subr.bf16.mxu0 %v1196_v43 }
 0x108   :  { %1092 = vmatpush3.bf16.msra.mxu0 %v1165_v47 }
 0x109   :  { %1093 = vmatprep.subr.bf16.mxu0 %v1196_v43 }
 0x10c   :  { %1094 = vmatpush3.bf16.msra.mxu0 %v1166_v48 }
 0x1b9   :  { %v1012_v16 = vpop.f32.mrb[0].mxu1 }
 0x1ba   :  { %v1013_v17 = vpop.f32.mrb[1].mxu1 }
 0x1bb   :  { %v1014_v18 = vadd.f32 %v1013_v17, %v1012_v16  ;;  %v1015_v19 = vpop.f32.mrb[2].mxu1 }
 0x1bc   :  { %v1016_v20 = vpop.f32.mrb[3].mxu1 }
 0x1bd   :  { %v309_v37 = vadd.f32 %v1014_v18, %v932_v35 }
 0x1bf   :  { %v314_v38 = vpack.c.bf16 %v309_v37, %v309_v37 }
 0x1c1   :  { %v544_v22 = vpop.f32.mrb[8].mxu0 }
 0x1c2   :  { %v545_v23 = vadd.f32 %v955_v21, %v544_v22  ;;  %v546_v24 = vpop.f32.mrb[9].mxu0 }
 0x1c3   :  { %v547_v25 = vpop.f32.mrb[10].mxu0 }
 0x1c4   :  { %v550_v27 = vpack.c.bf16 %v545_v23, %v545_v23  ;;  %v548_v28 = vpop.f32.mrb[11].mxu0 }
 0x1c6   :  { %1056 = vmatmul.mubr.msk.bf16.vlgmr.msra.gmra.mrb[4].mxu1 %vm615_vm5, %v550_v27 }
 0x1c7   :  { %1060 = vmatpush3.bf16.msra.mxu1 %v1151_v26  ;;  %1075 = vmatprep.mubr.msk.bf16.mxu1 %vm1197_vm4, %v1196_v43 }
 0x1c8   :  { %1061 = vmatprep.subr.bf16.mxu1 %v1196_v43 }
 0x1cb   :  { %1062 = vmatpush3.bf16.msra.mxu1 %v1152_v29 }
 0x1cc   :  { %1063 = vmatprep.subr.bf16.mxu1 %v1196_v43 }
 0x1cf   :  { %1064 = vmatpush3.bf16.msra.mxu1 %v1153_v30 }
 0x1d0   :  { %1065 = vmatprep.subr.bf16.mxu1 %v1196_v43 }
 0x1d3   :  { %1066 = vmatpush3.bf16.msra.mxu1 %v1154_v31 }
 0x1d4   :  { %1067 = vmatprep.subr.bf16.mxu1 %v1196_v43 }
 0x1d7   :  { %1068 = vmatpush3.bf16.msra.mxu1 %v1155_v32 }
 0x1d8   :  { %1069 = vmatprep.subr.bf16.mxu1 %v1196_v43 }
 0x1db   :  { %1070 = vmatpush3.bf16.msra.mxu1 %v1156_v33 }
 0x1dc   :  { %1071 = vmatprep.subr.bf16.mxu1 %v1196_v43 }
 0x1df   :  { %1072 = vmatpush3.bf16.msra.mxu1 %v1157_v34 }
 0x1e0   :  { %1073 = vmatprep.subr.bf16.mxu1 %v1196_v43 }
 0x1e3   :  { %1074 = vmatpush3.bf16.msra.mxu1 %v1158_v36 }
 0x1e6   :  { %1076 = vmatmul.mubr.bf16.vlgmr.msra.gmra.mrb[8].mxu1 %v314_v38 }
 0x299   :  { %v653_v49 = vpop.f32.mrb[4].mxu1 }
 0x29a   :  { %v1057_v50 = vpop.f32.mrb[5].mxu1 }
 0x29b   :  { %v656_v51 = vpop.f32.mrb[6].mxu1 }
 0x29c   :  { %v1058_v52 = vpop.f32.mrb[7].mxu1 }
 0x2b9   :  { %v741_v53 = vpop.f32.mrb[8].mxu1 }
 0x2ba   :  { %v742_v55 = vadd.f32 %v741_v53, %v653_v49  ;;  %v1077_v56 = vpop.f32.mrb[9].mxu1 }
 0x2bb   :  { %v744_v57 = vpop.f32.mrb[10].mxu1 }
 0x2bc   :  { %v754_v58 = vadd.f32 %v984_v54, %v742_v55  ;;  %v1078_v59 = vpop.f32.mrb[11].mxu1 }
 0x2be   :  { %v755_v43 = vmax.f32 %v754_v58, 0.0 }
 0x2c0   :  { %v756_v60 = vpack.c.bf16 %v755_v43, %v755_v43 }
 0x2c2   :  { %1096 = vmatmul.mubr.bf16.vlgmr.msra.gmra.mrb[12].mxu0 %v756_v60 }
 0x395   :  { %v862_v62 = vpop.f32.mrb[12].mxu0 }
 0x396   :  { %v863_v63 = vadd.f32 %v985_v61, %v862_v62  ;;  %v1097_v0 = vpop.f32.mrb[13].mxu0 }
 0x397   :  { %v865_v1 = vpop.f32.mrb[14].mxu0 }
 0x398   :  { %868 = vmax.xlane.f32.xlu0 %v863_v63  ;;  %v1098_v2 = vpop.f32.mrb[15].mxu0 }
 0x425   :  { %v869_v3 = vpop.xlane.xlu0 %868 }
 0x426   :  { %v870_v4 = vsub.f32 %v863_v63, %v869_v3 }
 0x428   :  { %v871_v5 = vmul.f32 1.442695, %v870_v4 }
 0x42a   :  { %1167 = vpow2.f32 %v871_v5 }
 0x434   :  { %v1168_v6 = vpop.eup %1167 }
 0x435   :  { %873 = vadd.xlane.f32.xlu0 %v1168_v6 }
 0x4c2   :  { %v874_v7 = vpop.xlane.xlu0 %873 }
 0x4c3   :  { %1169 = vrcp.f32 %v874_v7 }
 0x4cd   :  { %v1170_v11 = vpop.eup %1169 }
 0x4ce   :  { %v876_v13 = vmul.f32 %v1170_v11, %v1168_v6 }
 0x4d0   :  { %v877_v14 = vpack.c.bf16 %v876_v13, %v876_v13 }
 0x4d2   :  { %v885_v15 = vrot.slane %v877_v14, %v884_v12 }
 0x4d4   :  { %v886_v16 = vcombine.high %v885_v15, %v885_v15  ;;  %v893_v17 = vrot.slane %v885_v15, %v884_v12  ;;  %994 = vst.sshfl [vmem:[#allocation2] sm:$0x1 pattern:$0x73625140] %v885_v15 }
 0x4d6   :  { %v900_v18 = vrot.slane %v886_v16, %v884_v12  ;;  %v901_v19 = vcombine.high %v893_v17, %v893_v17  ;;  %995 = vst.sshfl [vmem:[#allocation2 + $0x1] sm:$0x1 pattern:$0x73625140] %v886_v16 }
 0x4d8   :  { %v902_v20 = vcombine.high %v900_v18, %v900_v18  ;;  %909 = vst [vmem:[#allocation2 + $0x2] sm:$0x1] %v901_v19 }
 0x4da   :  { %910 = vst [vmem:[#allocation2 + $0x3] sm:$0x1] %v902_v20 }
 0x4db   :  { %915 = vsyncadd [#allocation3], 48  ;;  %s1199_s12 = smov [#allocation2]  }
 0x4dc   :  { %s916_s14 = sshll.u32 %s1199_s12, 4  ;;  %s917_s14 = int_to_ptr.vmem [resolvable:$true] %s916_s14 }
 0x4dd   :  { %s1171_s0 = scalar_lea.vmem %s917_s14, 16  ;;  %s1175_s3 = scalar_lea.vmem %s917_s14, 64 }
 0x4de   :  { %p1172_p0 = scmp.ne.s32.totalorder %s917_s14, %s1171_s0  ;;  %p1176_p1 = scmp.lt.s32.totalorder %s917_s14, %s917_s14 }
 0x4df   :  { %p1177_p2 = scmp.lt.s32.totalorder %s1175_s3, %s1171_s0 }
 0x4e1   :  { %p1178_p3 = por %p1177_p2, %p1176_p1 }
 0x4e3   :  { %p1179_p4 = pnand %p1178_p3, %p1172_p0 }
 0x4e5   :  { %1182 = shalt.err (!%p1179_p4)
}
 0x4e6   :  { %s1183_s21 = scalar_lea.hbm %s1551_s15, 16 }
 0x4e7   :  { %p1184_p5 = scmp.ne.s32.totalorder %s1551_s15, %s1183_s21  ;;  %p1187_p6 = scmp.lt.u32.totalorder %s1183_s21, %s1551_s15 }
 0x4e9   :  { %p1189_p7 = pnand %p1187_p6, %p1184_p5 }
 0x4eb   :  { %1192 = shalt.err (!%p1189_p7)
}
 0x4ec   :  { %s1200_s25 = smov 16   ;;  %s1201_s26 = smov 1  }
 0x4ed   :  { %922 = dma.vmem_to_hbm [thread:$0]  %s917_s14, 16, %s1551_s15, [#allocation3], %s1200_s25, %s1200_s25, %s1201_s26  }
 0x4ee   :  { %1193 = dma.done.wait [#allocation3], 64  }
 0x4ef   :  { %1194 = vsyncadd [#allocation3], 4294967232 }
 0x4f0   :  { %926 = vsyncpa [#allocation3], 1 }

</bundles_post_ra>
